<compile_context>
chip_gen: v7x
topology: tpu7x:2x2x1
jax: 0.10.0
libtpu: 0.0.40
codegen_flags: <defaults>
</compile_context>

<pallas_src>
import functools

import jax
import jax.numpy as jnp
from jax import lax
from jax.experimental import pallas as pl
from jax.experimental.pallas import tpu as pltpu


def _round_up(x, m):
    return ((x + m - 1) // m) * m


def _vmem_budget():
    """Return (usable_budget, vmem_limit_bytes, physical_capacity) per chip."""
    try:
        cap = int(pltpu.get_tpu_info().vmem_capacity_bytes)
    except Exception:  # interpret mode / query unavailable -> be conservative
        cap = 64 * 1024 * 1024  # v7x per-TensorCore VMEM
    # ~75% of physical, capped at 96 MiB: 96 MiB on v5e/v6e (128 MiB physical),
    # 48 MiB on v7x (64 MiB per core).
    limit = min((cap * 3) // 4, 96 * 1024 * 1024)
    budget = limit - 2 * 1024 * 1024  # slack under the scoped limit
    return budget, limit, cap


def _pick_tiles(B, N, Q, dtype, use_scratch, tb, tn):
    """Choose (TB, TN, vmem_limit) from the real (padded) VMEM footprint."""
    itemsize = jnp.dtype(dtype).itemsize
    sublane = max(8, (8 * 4) // itemsize)   # rows per sublane tile: 8 f32 / 16 bf16
    q_pad = _round_up(Q, 128)               # lane padding of the last dim in VMEM
    budget, vmem_limit, cap = _vmem_budget()

    if tb is None:
        # Sublane-dense accumulators and finalize stores: TB in 8..32 (or == B).
        tb = B if B <= 32 else 32
        # v7x heuristic (64 MiB VMEM, 2 TensorCores): keep >=2 blocks on the
        # "parallel" B axis so the second core isn't idle, staying 8-aligned.
        if cap <= 64 * 1024 * 1024 and B >= 16:
            tb = min(tb, max(8, ((B // 2) // 8) * 8))

    if tn is None:
        # Resident (3, TB, Q) output block (double-buffered) + optional scratch.
        fixed = 2 * 3 * _round_up(tb, 8) * q_pad * itemsize
        if use_scratch:
            fixed += 2 * _round_up(tb, 8) * q_pad * 4
        per_row = 2 * tb * q_pad * itemsize          # double-buffered input rows
        avail = max(budget - fixed, per_row * sublane)
        tn = max(sublane, (avail // per_row) // sublane * sublane)
        if tn >= N:
            tn = N                                    # single chunk, no masking
    else:
        tn = min(tn, N)
    return tb, tn, vmem_limit


def _combine_kernel(x_ref, out_ref, *scratch, n_total, tn, mask_n, use_scratch):
    """Streamed sum/max over N; finalize writes [sum | max | mean] slabs."""
    k = pl.program_id(1)
    last = pl.num_programs(1) - 1

    if use_scratch:                 # narrow dtypes: f32 scratch accumulators
        sum_ref, max_ref = scratch
    else:                           # f32 output: accumulate in the resident block
        sum_ref, max_ref = out_ref.at[0], out_ref.at[1]

    @pl.when(k == 0)
    def _init():
        sum_ref[...] = jnp.zeros(sum_ref.shape, jnp.float32)
        max_ref[...] = jnp.full(max_ref.shape, -jnp.inf, jnp.float32)

    x = x_ref[...].astype(jnp.float32)               # (TB, TN, Q)

    def _accumulate(x_sum, x_max):
        sum_ref[...] = sum_ref[...] + jnp.sum(x_sum, axis=1)
        max_ref[...] = jnp.maximum(max_ref[...], jnp.max(x_max, axis=1))

    if mask_n:
        # Only the last chunk can run past the true N: full chunks accumulate
        # with no masking work at all.
        @pl.when(k < last)
        def _full_chunk():
            _accumulate(x, x)

        @pl.when(k == last)
        def _partial_chunk():
            row = k * tn + lax.broadcasted_iota(jnp.int32, x.shape, 1)
            valid = row < n_total
            _accumulate(jnp.where(valid, x, 0.0), jnp.where(valid, x, -jnp.inf))
    else:
        _accumulate(x, x)

    @pl.when(k == last)
    def _finalize():
        s = sum_ref[...]
        if use_scratch:
            out_ref[0, :, :] = s.astype(out_ref.dtype)                   # SumOP
            out_ref[1, :, :] = max_ref[...].astype(out_ref.dtype)        # MaxOP
        out_ref[2, :, :] = (s * (1.0 / n_total)).astype(out_ref.dtype)   # MeanOP


def combine_op(x, *, tb=None, tn=None):
    """x: (B, N, Q) -> (B, 3*Q) = concat([sum, max, mean], axis=-1)."""
    B, N, Q = x.shape
    use_scratch = jnp.dtype(x.dtype) != jnp.dtype(jnp.float32)
    tb, tn, vmem_limit = _pick_tiles(B, N, Q, x.dtype, use_scratch, tb, tn)
    grid = (pl.cdiv(B, tb), pl.cdiv(N, tn))
    mask_n = (N % tn) != 0

    kernel = functools.partial(
        _combine_kernel, n_total=N, tn=tn, mask_n=mask_n, use_scratch=use_scratch)

    scratch_shapes = []
    if use_scratch:
        scratch_shapes = [pltpu.VMEM((tb, Q), jnp.float32),   # running sum
                          pltpu.VMEM((tb, Q), jnp.float32)]   # running max

    itemsize = jnp.dtype(x.dtype).itemsize
    # NOTE: pipeline_mode=pl.Buffered(3) on the input spec is an optional sweep
    # once tiles are sized; default double-buffering kept here.
    out3 = pl.pallas_call(
        kernel,
        out_shape=jax.ShapeDtypeStruct((3, B, Q), x.dtype),
        grid_spec=pltpu.PrefetchScalarGridSpec(
            num_scalar_prefetch=0,
            grid=grid,
            in_specs=[pl.BlockSpec((tb, tn, Q), lambda b, k: (b, k, 0))],
            out_specs=pl.BlockSpec((3, tb, Q), lambda b, k: (0, b, 0)),
            scratch_shapes=scratch_shapes,
        ),
        compiler_params=pltpu.CompilerParams(
            dimension_semantics=("parallel", "arbitrary"),
            vmem_limit_bytes=int(vmem_limit),
        ),
        cost_estimate=pl.CostEstimate(
            flops=2 * B * N * Q,
            transcendentals=0,
            bytes_accessed=B * N * Q * itemsize + 3 * B * Q * itemsize,
        ),
    )(x)
    # (3, B, Q) -> (B, 3, Q) -> (B, 3*Q): identical to concat([sum,max,mean],-1).
    return jnp.moveaxis(out3, 0, 1).reshape(B, 3 * Q)


def combine_op_ref(x):
    """Pure-JAX reference mirroring the PyTorch forward."""
    s = jnp.sum(x, axis=1)
    m = jnp.max(x, axis=1)
    mean = jnp.mean(x, axis=1)
    return jnp.concatenate([s, m, mean], axis=-1)


if __name__ == "__main__":
    key = jax.random.PRNGKey(0)

    # Small canonical shape: batch=2, points=8, features=32 (single N chunk).
    B, N, Q = 2, 8, 32
    x = jax.random.normal(key, (B, N, Q), dtype=jnp.float32)
    out = combine_op(x)
    jax.block_until_ready(out)
    ref = combine_op_ref(x)
    assert out.shape == (B, 3 * Q)
    assert jnp.allclose(out, ref, atol=1e-5, rtol=1e-5)

    # Streamed N axis with a partial (masked) last chunk.
    B2, N2, Q2 = 2, 20, 32
    x2 = jax.random.normal(jax.random.PRNGKey(1), (B2, N2, Q2), dtype=jnp.float32)
    out2 = combine_op(x2, tn=8)          # cdiv(20, 8) = 3 chunks, last is partial
    jax.block_until_ready(out2)
    ref2 = combine_op_ref(x2)
    assert out2.shape == (B2, 3 * Q2)
    assert jnp.allclose(out2, ref2, atol=1e-5, rtol=1e-5)

    # Larger batch + lane-dense Q: exercises sublane-full TB (and the >=2-block
    # split on 64-MiB-VMEM chips) plus multi-chunk streaming with masking.
    B3, N3, Q3 = 16, 40, 128
    x3 = jax.random.normal(jax.random.PRNGKey(2), (B3, N3, Q3), dtype=jnp.float32)
    out3 = combine_op(x3, tn=16)         # cdiv(40, 16) = 3 chunks, last is partial
    jax.block_until_ready(out3)
    ref3 = combine_op_ref(x3)
    assert out3.shape == (B3, 3 * Q3)
    assert jnp.allclose(out3, ref3, atol=1e-5, rtol=1e-5)

    print("KERNEL_OK")
</pallas_src>

<mosaic_0001>
module attributes {stable_mosaic.version = 11 : i64} {
  func.func @_combine_kernel(%arg0: i32, %arg1: i32, %arg2: memref<2x8x32xf32, #tpu.memory_space<vmem>>, %arg3: memref<3x2x32xf32, #tpu.memory_space<vmem>>) attributes {dimension_semantics = [#tpu.dimension_semantics<parallel>, #tpu.dimension_semantics<arbitrary>], iteration_bounds = array<i64: 1, 1>, scalar_prefetch = 0 : i64, scratch_operands = 0 : i64, tpu.core_type = #tpu.core_type<tc>, window_params = [{transform_indices = @transform_0, window_bounds = array<i64: 2, 8, 32>}, {transform_indices = @transform_1, window_bounds = array<i64: 3, 2, 32>}]} {
    %c0_i32 = arith.constant 0 : i32
    %0 = arith.cmpi eq, %arg1, %c0_i32 : i32
    %1 = arith.extui %0 : i1 to i32
    %c0_i32_0 = arith.constant 0 : i32
    %c1_i32 = arith.constant 1 : i32
    %c0_i32_1 = arith.constant 0 : i32
    %2 = arith.cmpi ne, %1, %c0_i32_1 : i32
    scf.if %2 {
      %cst_19 = arith.constant 0.000000e+00 : f32
      %21 = vector.broadcast %cst_19 : f32 to vector<2x32xf32>
      %22 = arith.index_cast %c0_i32_0 : i32 to index
      %c0_20 = arith.constant 0 : index
      %c0_21 = arith.constant 0 : index
      %23 = vector.load %arg3[%22, %c0_20, %c0_21] : memref<3x2x32xf32, #tpu.memory_space<vmem>>, vector<1x2x32xf32>
      %24 = vector.shape_cast %23 : vector<1x2x32xf32> to vector<2x32xf32>
      %25 = vector.shape_cast %21 : vector<2x32xf32> to vector<1x2x32xf32>
      tpu.vector_store %arg3[%22, %c0_20, %c0_21], %25 {strides = array<i32>} : memref<3x2x32xf32, #tpu.memory_space<vmem>>, vector<1x2x32xf32>,
      %cst_22 = arith.constant 0xFF800000 : f32
      %26 = vector.broadcast %cst_22 : f32 to vector<2x32xf32>
      %27 = arith.index_cast %c1_i32 : i32 to index
      %c0_23 = arith.constant 0 : index
      %c0_24 = arith.constant 0 : index
      %28 = vector.load %arg3[%27, %c0_23, %c0_24] : memref<3x2x32xf32, #tpu.memory_space<vmem>>, vector<1x2x32xf32>
      %29 = vector.shape_cast %28 : vector<1x2x32xf32> to vector<2x32xf32>
      %30 = vector.shape_cast %26 : vector<2x32xf32> to vector<1x2x32xf32>
      tpu.vector_store %arg3[%27, %c0_23, %c0_24], %30 {strides = array<i32>} : memref<3x2x32xf32, #tpu.memory_space<vmem>>, vector<1x2x32xf32>,
    } else {
    }
    %c0 = arith.constant 0 : index
    %c0_2 = arith.constant 0 : index
    %c0_3 = arith.constant 0 : index
    %3 = vector.load %arg2[%c0, %c0_2, %c0_3] : memref<2x8x32xf32, #tpu.memory_space<vmem>>, vector<2x8x32xf32>
    %c0_4 = arith.constant 0 : index
    %c0_5 = arith.constant 0 : index
    %c0_6 = arith.constant 0 : index
    %4 = vector.load %arg3[%c0_4, %c0_5, %c0_6] : memref<3x2x32xf32, #tpu.memory_space<vmem>>, vector<1x2x32xf32>
    %5 = vector.shape_cast %4 : vector<1x2x32xf32> to vector<2x32xf32>
    %cst = arith.constant dense<0.000000e+00> : vector<2x32xf32>
    %6 = vector.multi_reduction <add>, %3, %cst [1] : vector<2x8x32xf32> to vector<2x32xf32>
    %7 = arith.addf %5, %6 : vector<2x32xf32>
    %c0_7 = arith.constant 0 : index
    %c0_8 = arith.constant 0 : index
    %c0_9 = arith.constant 0 : index
    %8 = vector.load %arg3[%c0_7, %c0_8, %c0_9] : memref<3x2x32xf32, #tpu.memory_space<vmem>>, vector<1x2x32xf32>
    %9 = vector.shape_cast %8 : vector<1x2x32xf32> to vector<2x32xf32>
    %10 = vector.shape_cast %7 : vector<2x32xf32> to vector<1x2x32xf32>
    tpu.vector_store %arg3[%c0_7, %c0_8, %c0_9], %10 {strides = array<i32>} : memref<3x2x32xf32, #tpu.memory_space<vmem>>, vector<1x2x32xf32>,
    %c1 = arith.constant 1 : index
    %c0_10 = arith.constant 0 : index
    %c0_11 = arith.constant 0 : index
    %11 = vector.load %arg3[%c1, %c0_10, %c0_11] : memref<3x2x32xf32, #tpu.memory_space<vmem>>, vector<1x2x32xf32>
    %12 = vector.shape_cast %11 : vector<1x2x32xf32> to vector<2x32xf32>
    %cst_12 = arith.constant dense<0xFF800000> : vector<2x32xf32>
    %13 = vector.multi_reduction <maximumf>, %3, %cst_12 [1] : vector<2x8x32xf32> to vector<2x32xf32>
    %14 = arith.maximumf %12, %13 : vector<2x32xf32>
    %c1_13 = arith.constant 1 : index
    %c0_14 = arith.constant 0 : index
    %c0_15 = arith.constant 0 : index
    %15 = vector.load %arg3[%c1_13, %c0_14, %c0_15] : memref<3x2x32xf32, #tpu.memory_space<vmem>>, vector<1x2x32xf32>
    %16 = vector.shape_cast %15 : vector<1x2x32xf32> to vector<2x32xf32>
    %17 = vector.shape_cast %14 : vector<2x32xf32> to vector<1x2x32xf32>
    tpu.vector_store %arg3[%c1_13, %c0_14, %c0_15], %17 {strides = array<i32>} : memref<3x2x32xf32, #tpu.memory_space<vmem>>, vector<1x2x32xf32>,
    %c0_i32_16 = arith.constant 0 : i32
    %18 = arith.cmpi eq, %arg1, %c0_i32_16 : i32
    %19 = arith.extui %18 : i1 to i32
    %c0_i32_17 = arith.constant 0 : i32
    %c0_i32_18 = arith.constant 0 : i32
    %20 = arith.cmpi ne, %19, %c0_i32_18 : i32
    scf.if %20 {
      %21 = arith.index_cast %c0_i32_17 : i32 to index
      %c0_19 = arith.constant 0 : index
      %c0_20 = arith.constant 0 : index
      %22 = vector.load %arg3[%21, %c0_19, %c0_20] : memref<3x2x32xf32, #tpu.memory_space<vmem>>, vector<1x2x32xf32>
      %23 = vector.shape_cast %22 : vector<1x2x32xf32> to vector<2x32xf32>
      %cst_21 = arith.constant 1.250000e-01 : f32
      %24 = vector.broadcast %cst_21 : f32 to vector<2x32xf32>
      %25 = arith.mulf %23, %24 : vector<2x32xf32>
      %c2 = arith.constant 2 : index
      %c0_22 = arith.constant 0 : index
      %c0_23 = arith.constant 0 : index
      %26 = vector.load %arg3[%c2, %c0_22, %c0_23] : memref<3x2x32xf32, #tpu.memory_space<vmem>>, vector<1x2x32xf32>
      %27 = vector.shape_cast %26 : vector<1x2x32xf32> to vector<2x32xf32>
      %28 = vector.shape_cast %25 : vector<2x32xf32> to vector<1x2x32xf32>
      tpu.vector_store %arg3[%c2, %c0_22, %c0_23], %28 {strides = array<i32>} : memref<3x2x32xf32, #tpu.memory_space<vmem>>, vector<1x2x32xf32>,
    } else {
    }
    return
  }
  func.func @transform_0(%arg0: i32, %arg1: i32) -> (i32, i32, i32) {
    %c0_i32 = arith.constant 0 : i32
    %c0_i32_0 = arith.constant 0 : i32
    return %arg0, %arg1, %c0_i32 : i32, i32, i32
  }
  func.func @transform_1(%arg0: i32, %arg1: i32) -> (i32, i32, i32) {
    %c0_i32 = arith.constant 0 : i32
    %c0_i32_0 = arith.constant 0 : i32
    %c0_i32_1 = arith.constant 0 : i32
    return %c0_i32, %arg0, %c0_i32_0 : i32, i32, i32
  }
}

</mosaic_0001>

<bundles_post_ra>
// kernel: tpu_custom_call.1
= control target key start
LH: loop header
LB: loop body
LE: loop exit
PB: predicated region body
PF: predicated region fallthrough
CT: control target
= control target key end

     0   :  { %6 = vsyncpa [#allocation3], 0  ;;  %s206_s0 = inlined_call_operand.hbm [shape: f32[2,8,32], index: 0, kind: input, shape index: {}]   ;;  %s207_s1 = inlined_call_operand.hbm [shape: f32[3,2,32], index: 1, kind: output, shape index: {}]  }
   0x1   :  { %7 = vsyncpa [#allocation4], 0  ;;  %s159_s6 = smov [#allocation2]   ;;  %s111_s10 = scalar_lea.hbm %s206_s0, 256 }
   0x2   :  { %s13_s7 = sshll.u32 %s159_s6, 4  ;;  %p112_p0 = scmp.ne.s32.totalorder %s206_s0, %s111_s10  ;;  %s14_s7 = int_to_ptr.vmem [resolvable:$true] %s13_s7 }
   0x3   :  { %p115_p1 = scmp.lt.u32.totalorder %s111_s10, %s206_s0 }
   0x5   :  { %p117_p2 = pnand %p115_p1, %p112_p0 }
   0x7   :  { %120 = shalt.err (!%p117_p2)
}
   0x8   :  { %s121_s15 = scalar_lea.vmem %s14_s7, 256  ;;  %p126_p4 = scmp.lt.s32.totalorder %s14_s7, %s14_s7 }
   0x9   :  { %p122_p3 = scmp.ne.s32.totalorder %s14_s7, %s121_s15  ;;  %p127_p5 = scmp.lt.s32.totalorder %s121_s15, %s121_s15 }
   0xb   :  { %p128_p6 = por %p127_p5, %p126_p4 }
   0xd   :  { %p129_p7 = pnand %p128_p6, %p122_p3 }
   0xf   :  { %132 = shalt.err (!%p129_p7)
}
  0x10   :  { %s160_s16 = smov 128   ;;  %s161_s17 = smov 8  }
  0x11   :  { %19 = dma.hbm_to_vmem [thread:$0]  %s206_s0, 256, %s14_s7, [#allocation3], %s160_s16, %s160_s16, %s161_s17  }
  0x12   :  { %155 = dma.done.wait [#allocation3], 256  }
  0x13   :  { %156 = vsyncadd [#allocation3], 4294967040  ;;  %vm27_vm0 = vcmask 254976   ;;  %v162_v0 = vmov 0.0   ;;  %v163_v1 = vmov -inf   ;;  %vm34_vm1 = vcmask 261120  }
  0x14   :  { %28 = vst.msk [vmem:[#allocation5] sm:$0x3] %vm27_vm0, %v162_v0  ;;  %30 = vst.msk [vmem:[#allocation5 + $0x2] sm:$0x3] %vm27_vm0, %v163_v1  ;;  %v31_v2 = vld [vmem:[#allocation2] sm:$0xff]  ;;  %v32_v3 = vld [vmem:[#allocation2 + $0x8] sm:$0xff] }
  0x15   :  { %v35_v4 = vsel %vm34_vm1, %v31_v2, 0.0  ;;  %v42_v5 = vsel %vm34_vm1, %v32_v3, 0.0  ;;  %v59_v8 = vsel %vm34_vm1, %v31_v2, -inf  ;;  %v66_v9 = vsel %vm34_vm1, %v32_v3, -inf  ;;  %s164_s0 = smov [#allocation5]  }
  0x16   :  { %v36_v6 = vrot.slane %v35_v4, 4  ;;  %v43_v7 = vrot.slane %v42_v5, 4  ;;  %v60_v10 = vrot.slane %v59_v8, 4  ;;  %v67_v11 = vrot.slane %v66_v9, 4  ;;  %s91_s20 = sshll.u32 %s164_s0, 4  ;;  %s92_s20 = int_to_ptr.vmem [resolvable:$true] %s91_s20 }
  0x17   :  { %vm51_vm2 = vcmask 1041409   ;;  %s133_s21 = scalar_lea.vmem %s92_s20, 96  ;;  %p138_p9 = scmp.lt.s32.totalorder %s92_s20, %s92_s20 }
  0x18   :  { %v37_v12 = vadd.f32 %v36_v6, %v35_v4  ;;  %v44_v13 = vadd.f32 %v43_v7, %v42_v5  ;;  %v61_v14 = vmax.f32 %v59_v8, %v60_v10  ;;  %v68_v15 = vmax.f32 %v66_v9, %v67_v11  ;;  %p134_p8 = scmp.ne.s32.totalorder %s92_s20, %s133_s21  ;;  %p139_p10 = scmp.lt.s32.totalorder %s133_s21, %s133_s21 }
  0x1a   :  { %v38_v16 = vrot.slane %v37_v12, 2  ;;  %v45_v17 = vrot.slane %v44_v13, 2  ;;  %v62_v18 = vrot.slane %v61_v14, 2  ;;  %v69_v19 = vrot.slane %v68_v15, 2  ;;  %p140_p11 = por %p139_p10, %p138_p9 }
  0x1b   :  { %v33_v28 = vld [vmem:[#allocation5] sm:$0x3]  ;;  %v58_v31 = vld [vmem:[#allocation5 + $0x2] sm:$0x3] }
  0x1c   :  { %v39_v20 = vadd.f32 %v38_v16, %v37_v12  ;;  %v46_v21 = vadd.f32 %v45_v17, %v44_v13  ;;  %v63_v22 = vmax.f32 %v61_v14, %v62_v18  ;;  %v70_v23 = vmax.f32 %v68_v15, %v69_v19  ;;  %p141_p12 = pnand %p140_p11, %p134_p8 }
  0x1e   :  { %v40_v24 = vrot.slane %v39_v20, 1  ;;  %v47_v25 = vrot.slane %v46_v21, 1  ;;  %v64_v26 = vrot.slane %v63_v22, 1  ;;  %v71_v27 = vrot.slane %v70_v23, 1 }
  0x20   :  { %v41_v29 = vadd.f32 %v40_v24, %v39_v20  ;;  %v48_v30 = vadd.f32 %v47_v25, %v46_v21  ;;  %v65_v32 = vmax.f32 %v63_v22, %v64_v26  ;;  %v72_v33 = vmax.f32 %v70_v23, %v71_v27 }
  0x22   :  { %v52_v34 = vsel %vm51_vm2, %v48_v30, %v41_v29  ;;  %v75_v36 = vsel %vm51_vm2, %v72_v33, %v65_v32 }
  0x23   :  { %v54_v35 = vadd.f32 %v52_v34, %v33_v28  ;;  %v77_v37 = vmax.f32 %v58_v31, %v75_v36 }
  0x25   :  { %56 = vst.msk [vmem:[#allocation5] sm:$0x3] %vm27_vm0, %v54_v35  ;;  %78 = vst.msk [vmem:[#allocation5 + $0x2] sm:$0x3] %vm27_vm0, %v77_v37 }
  0x2c   :  { %v82_v38 = vld [vmem:[#allocation5] sm:$0x3] }
  0x2d   :  { %v83_v39 = vmul.f32 0.125, %v82_v38 }
  0x2f   :  { %85 = vst.msk [vmem:[#allocation5 + $0x4] sm:$0x3] %vm27_vm0, %v83_v39 }
  0x30   :  { %144 = shalt.err (!%p141_p12)
}
  0x31   :  { %s145_s24 = scalar_lea.hbm %s207_s1, 96 }
  0x32   :  { %p146_p13 = scmp.ne.s32.totalorder %s207_s1, %s145_s24  ;;  %p149_p0 = scmp.lt.u32.totalorder %s145_s24, %s207_s1 }
  0x34   :  { %p151_p1 = pnand %p149_p0, %p146_p13 }
  0x36   :  { %154 = shalt.err (!%p151_p1)
}
  0x37   :  { %s165_s29 = smov 32   ;;  %s166_s30 = smov 2  }
  0x38   :  { %97 = dma.vmem_to_hbm [thread:$0]  %s92_s20, 96, %s207_s1, [#allocation4], %s165_s29, %s165_s29, %s166_s30  }
  0x39   :  { %157 = dma.done.wait [#allocation4], 96  }
  0x3a   :  { %158 = vsyncadd [#allocation4], 4294967200 }
  0x3b   :  { %101 = vsyncpa [#allocation3], 1 }
  0x3c   :  { %102 = vsyncpa [#allocation4], 1 }

</bundles_post_ra>
